<compile_context>
chip_gen: v6e
topology: v6e:2x2x1
jax: 0.10.0
libtpu: 0.0.40
codegen_flags: <defaults>
</compile_context>

<pallas_src>
import functools
import math

import jax
import jax.numpy as jnp
from jax.experimental import pallas as pl
from jax.experimental.pallas import tpu as pltpu


def _round_up(x, m):
    return -(-x // m) * m


def _cdiv(a, b):
    return -(-a // b)


def _chip_config():
    """Per-generation tiling defaults (block bytes / VMEM limit / TC count)."""
    try:
        kind = jax.devices()[0].device_kind.lower()
    except Exception:  # defensive: fall back to conservative defaults
        kind = ""
    if "v7" in kind or "7x" in kind:
        # v7x: 3.2 TB/s HBM, 64 MiB VMEM, 2 TensorCores -> bigger blocks to
        # amortize per-step overhead, and always split across both cores.
        # Budget: 2 inputs x 2 buffers x 8 MiB = 32 MiB (+ tiny accumulator).
        return {"num_cores": 2, "block_bytes": 8 << 20, "vmem_limit": 40 << 20}
    if "v6" in kind or "v5p" in kind or "v4" in kind:
        # 128 MiB physical VMEM: modest block bump (2x2x4 MiB = 16 MiB).
        return {"num_cores": 1, "block_bytes": 4 << 20, "vmem_limit": 32 << 20}
    # v5e and unknown chips: 2 MiB blocks already sit at the HBM roofline.
    return {"num_cores": 1, "block_bytes": 2 << 20, "vmem_limit": 32 << 20}


def _as_2d_view(x):
    """Lane-dense (rows, lanes) view of `x`, avoiding copies whenever possible."""
    if x.ndim >= 2 and x.shape[-1] % 128 == 0 and 0 < x.shape[-1] <= 8192:
        rows = math.prod(x.shape[:-1])
        if rows >= 8:
            # Pure collapse of leading dims: no data movement.
            return x.reshape(rows, x.shape[-1])
    flat = x.reshape(-1)
    n = flat.size
    for lanes in (512, 256, 128):
        if n % lanes == 0 and n // lanes >= 8:
            # Pure reshape of the flat buffer: no data movement.
            return flat.reshape(n // lanes, lanes)
    # Ragged / tiny fallback: minimal zero pad up to the next (8, 128) tile
    # boundary only.  Zeros contribute exactly 0 to every loss term.
    lanes = 128
    rows = max(8, _round_up(_cdiv(n, lanes), 8))
    flat = jnp.pad(flat, (0, rows * lanes - n))
    return flat.reshape(rows, lanes)


def _bart_sums_kernel(pred_ref, tgt_ref, out_ref, *, term_names,
                      tiles_per_split, total_rows, needs_mask):
    """Accumulate per-term partial sums for one (tile_rows, lanes) block."""
    i = pl.program_id(1)  # position along the reduction ("arbitrary") axis

    @pl.when(i == 0)
    def _init():
        out_ref[...] = jnp.zeros_like(out_ref)

    p = pred_ref[...].astype(jnp.float32)
    t = tgt_ref[...].astype(jnp.float32)
    d = p - t
    rows, lanes = d.shape

    if needs_mask:
        # Overrun tiles (uneven split; DMA clamped to the last block) and the
        # partial last tile (garbage past the array) must contribute nothing:
        # zero every row whose global index is past the real data.
        s = pl.program_id(0)
        tile_start = (s * tiles_per_split + i) * rows
        row_ids = jax.lax.broadcasted_iota(jnp.int32, (rows, lanes), 0)
        d = jnp.where(row_ids < (total_rows - tile_start), d, 0.0)

    def fold(x):
        # (rows, lanes) -> (8, lanes): groups-of-8-rows reshape + leading-axis
        # sum == pure elementwise vreg adds; keeps the expensive cross-lane
        # reduction out of the hot loop.
        return jnp.sum(x.reshape(rows // 8, 8, lanes), axis=0)

    for k, name in enumerate(term_names):
        if name == "sq":
            v = d * d
        elif name == "ad":
            v = jnp.abs(d)
        else:  # "huber": SmoothL1 with beta = 1.0 (PyTorch nn.SmoothL1Loss default)
            ad = jnp.abs(d)
            v = jnp.where(ad < 1.0, 0.5 * d * d, ad - 0.5)
        out_ref[0, k] += fold(v)


_TERMS_FOR_LOSS = {
    "mse": ("sq",),
    "mae": ("ad",),
    "huber": ("huber",),
    "combined": ("sq", "ad"),
}


def _bart_loss_sums(predictions, targets, term_names):
    """Per-term global sums over all elements, as a (n_terms,) float32 vector."""
    cfg = _chip_config()
    p2 = _as_2d_view(predictions)
    t2 = _as_2d_view(targets)
    rows, lanes = p2.shape
    itemsize = jnp.dtype(p2.dtype).itemsize
    n_terms = len(term_names)

    # Sublane packing of the input dtype (8 for 32-bit, 16 bf16, 32 for 8-bit).
    packing = 8 * max(1, 4 // max(1, itemsize))
    if rows < packing:
        packing = 8

    # One split per TensorCore, provided each split owns at least one tile.
    num_splits = max(1, min(cfg["num_cores"], rows // packing))

    # Tile rows: target the per-generation block bytes, but never exceed the
    # per-split share (so small inputs still feed every core) nor the array.
    tile_rows_bytes = max(packing,
                          (cfg["block_bytes"] // (lanes * itemsize))
                          // packing * packing)
    tile_rows_split = _round_up(_cdiv(rows, num_splits), packing)
    row_cap = (rows // packing) * packing
    tile_rows = max(packing, min(tile_rows_bytes, tile_rows_split, row_cap))

    total_tiles = _cdiv(rows, tile_rows)
    tiles_per_split = _cdiv(total_tiles, num_splits)
    last_block = total_tiles - 1
    needs_mask = (num_splits * tiles_per_split * tile_rows) != rows

    def in_index_map(s, i):
        # Clamp overrun tiles (ragged tail / uneven split) to the last valid
        # block; the kernel's row mask discards anything it must not count.
        return (jnp.minimum(s * tiles_per_split + i, last_block), 0)

    kernel = functools.partial(
        _bart_sums_kernel, term_names=term_names,
        tiles_per_split=tiles_per_split, total_rows=rows,
        needs_mask=needs_mask)

    n_elems = rows * lanes
    cost = pl.CostEstimate(
        flops=int((2 + 3 * n_terms) * n_elems),
        transcendentals=0,
        bytes_accessed=int(2 * n_elems * itemsize
                           + num_splits * n_terms * 8 * lanes * 4),
    )

    partials = pl.pallas_call(
        kernel,
        out_shape=jax.ShapeDtypeStruct((num_splits, n_terms, 8, lanes),
                                       jnp.float32),
        grid=(num_splits, tiles_per_split),
        in_specs=[
            pl.BlockSpec((tile_rows, lanes), in_index_map),
            pl.BlockSpec((tile_rows, lanes), in_index_map),
        ],
        out_specs=pl.BlockSpec((1, n_terms, 8, lanes),
                               lambda s, i: (s, 0, 0, 0)),
        compiler_params=pltpu.CompilerParams(
            dimension_semantics=("parallel", "arbitrary"),
            vmem_limit_bytes=cfg["vmem_limit"],
        ),
        cost_estimate=cost,
    )(p2, t2)

    # Tiny final cross-lane reduction of the vreg-shaped partials: plain JAX.
    return jnp.sum(partials, axis=(0, 2, 3))


def bart_loss(predictions, targets, loss_type="mse", alpha=0.5):
    """JAX/Pallas port of BARTLoss.forward. Returns a scalar float32 loss."""
    assert predictions.shape == targets.shape
    if loss_type not in _TERMS_FOR_LOSS:
        raise ValueError(f"Unsupported loss type: {loss_type}")
    terms = _TERMS_FOR_LOSS[loss_type]
    sums = _bart_loss_sums(predictions, targets, terms)
    means = sums / predictions.size
    if loss_type == "combined":
        return alpha * means[0] + (1.0 - alpha) * means[1]
    return means[0]


if __name__ == "__main__":
    def ref_losses(pred, tgt, alpha):
        d = pred.astype(jnp.float32) - tgt.astype(jnp.float32)
        ad = jnp.abs(d)
        mse = jnp.mean(d * d)
        mae = jnp.mean(ad)
        huber = jnp.mean(jnp.where(ad < 1.0, 0.5 * d * d, ad - 0.5))
        return {"mse": mse, "mae": mae, "huber": huber,
                "combined": alpha * mse + (1.0 - alpha) * mae}

    alpha = 0.5
    key = jax.random.PRNGKey(0)
    keys = jax.random.split(key, 8)

    # Case 1: the module's natural small shape (ragged fallback path).
    pred_s = jax.random.normal(keys[0], (2, 8), jnp.float32)
    tgt_s = jax.random.normal(keys[1], (2, 8), jnp.float32)

    # Case 2: lane-aligned shape -> zero-copy 2-D fast path, tiled grid.
    pred_l = jax.random.normal(keys[2], (1200, 512), jnp.float32)
    tgt_l = jax.random.normal(keys[3], (1200, 512), jnp.float32)

    # Case 3: ragged last dim (minimal pad + in-kernel row handling).
    pred_r = jax.random.normal(keys[4], (7, 300), jnp.float32)
    tgt_r = jax.random.normal(keys[5], (7, 300), jnp.float32)

    # Case 4: bf16 inputs fed directly (no wrapper upcast, zero-copy view).
    pred_b = jax.random.normal(keys[6], (64, 384), jnp.float32).astype(jnp.bfloat16)
    tgt_b = jax.random.normal(keys[7], (64, 384), jnp.float32).astype(jnp.bfloat16)

    for pred, tgt in ((pred_s, tgt_s), (pred_l, tgt_l),
                      (pred_r, tgt_r), (pred_b, tgt_b)):
        refs = ref_losses(pred, tgt, alpha)
        for lt in ("mse", "mae", "huber", "combined"):
            out = bart_loss(pred, tgt, loss_type=lt, alpha=alpha)
            out = jax.block_until_ready(out)
            assert jnp.allclose(out, refs[lt], atol=1e-5, rtol=1e-4), (
                lt, pred.shape, out, refs[lt])

    print("KERNEL_OK")
</pallas_src>

<mosaic_0001>
module attributes {stable_mosaic.version = 11 : i64} {
  func.func @_bart_sums_kernel(%arg0: i32, %arg1: i32, %arg2: memref<8x128xf32, #tpu.memory_space<vmem>>, %arg3: memref<8x128xf32, #tpu.memory_space<vmem>>, %arg4: memref<1x1x8x128xf32, #tpu.memory_space<vmem>>) attributes {dimension_semantics = [#tpu.dimension_semantics<parallel>, #tpu.dimension_semantics<arbitrary>], iteration_bounds = array<i64: 1, 1>, scalar_prefetch = 0 : i64, scratch_operands = 0 : i64, tpu.core_type = #tpu.core_type<tc>, window_params = [{transform_indices = @transform_0, window_bounds = array<i64: 8, 128>}, {transform_indices = @transform_1, window_bounds = array<i64: 8, 128>}, {transform_indices = @transform_2, window_bounds = array<i64: 1, 1, 8, 128>}]} {
    %c0_i32 = arith.constant 0 : i32
    %0 = arith.cmpi eq, %arg1, %c0_i32 : i32
    %1 = arith.extui %0 : i1 to i32
    %c0_i32_0 = arith.constant 0 : i32
    %2 = arith.cmpi ne, %1, %c0_i32_0 : i32
    scf.if %2 {
      %cst_12 = arith.constant 0.000000e+00 : f32
      %15 = vector.broadcast %cst_12 : f32 to vector<1x1x8x128xf32>
      %c0_13 = arith.constant 0 : index
      %c0_14 = arith.constant 0 : index
      %c0_15 = arith.constant 0 : index
      %c0_16 = arith.constant 0 : index
      %16 = vector.load %arg4[%c0_13, %c0_14, %c0_15, %c0_16] : memref<1x1x8x128xf32, #tpu.memory_space<vmem>>, vector<1x1x8x128xf32>
      tpu.vector_store %arg4[%c0_13, %c0_14, %c0_15, %c0_16], %15 {strides = array<i32>} : memref<1x1x8x128xf32, #tpu.memory_space<vmem>>, vector<1x1x8x128xf32>,
    } else {
    }
    %c0 = arith.constant 0 : index
    %c0_1 = arith.constant 0 : index
    %3 = vector.load %arg2[%c0, %c0_1] : memref<8x128xf32, #tpu.memory_space<vmem>>, vector<8x128xf32>
    %c0_2 = arith.constant 0 : index
    %c0_3 = arith.constant 0 : index
    %4 = vector.load %arg3[%c0_2, %c0_3] : memref<8x128xf32, #tpu.memory_space<vmem>>, vector<8x128xf32>
    %5 = arith.subf %3, %4 : vector<8x128xf32>
    %6 = arith.mulf %5, %5 : vector<8x128xf32>
    %c0_4 = arith.constant 0 : index
    %c0_5 = arith.constant 0 : index
    %c0_6 = arith.constant 0 : index
    %c0_7 = arith.constant 0 : index
    %7 = vector.load %arg4[%c0_4, %c0_5, %c0_6, %c0_7] : memref<1x1x8x128xf32, #tpu.memory_space<vmem>>, vector<1x1x8x128xf32>
    %8 = vector.shape_cast %7 : vector<1x1x8x128xf32> to vector<8x128xf32>
    %9 = vector.shape_cast %6 : vector<8x128xf32> to vector<1x8x128xf32>
    %cst = arith.constant dense<0.000000e+00> : vector<8x128xf32>
    %10 = vector.multi_reduction <add>, %9, %cst [0] : vector<1x8x128xf32> to vector<8x128xf32>
    %11 = arith.addf %8, %10 : vector<8x128xf32>
    %c0_8 = arith.constant 0 : index
    %c0_9 = arith.constant 0 : index
    %c0_10 = arith.constant 0 : index
    %c0_11 = arith.constant 0 : index
    %12 = vector.load %arg4[%c0_8, %c0_9, %c0_10, %c0_11] : memref<1x1x8x128xf32, #tpu.memory_space<vmem>>, vector<1x1x8x128xf32>
    %13 = vector.shape_cast %12 : vector<1x1x8x128xf32> to vector<8x128xf32>
    %14 = vector.shape_cast %11 : vector<8x128xf32> to vector<1x1x8x128xf32>
    tpu.vector_store %arg4[%c0_8, %c0_9, %c0_10, %c0_11], %14 {strides = array<i32>} : memref<1x1x8x128xf32, #tpu.memory_space<vmem>>, vector<1x1x8x128xf32>,
    return
  }
  func.func @transform_0(%arg0: i32, %arg1: i32) -> (i32, i32) {
    %c1_i32 = arith.constant 1 : i32
    %0 = arith.muli %arg0, %c1_i32 : i32
    %1 = arith.addi %0, %arg1 : i32
    %c0_i32 = arith.constant 0 : i32
    %2 = arith.minsi %1, %c0_i32 : i32
    %c0_i32_0 = arith.constant 0 : i32
    %c0_i32_1 = arith.constant 0 : i32
    return %2, %c0_i32_0 : i32, i32
  }
  func.func @transform_1(%arg0: i32, %arg1: i32) -> (i32, i32) {
    %c1_i32 = arith.constant 1 : i32
    %0 = arith.muli %arg0, %c1_i32 : i32
    %1 = arith.addi %0, %arg1 : i32
    %c0_i32 = arith.constant 0 : i32
    %2 = arith.minsi %1, %c0_i32 : i32
    %c0_i32_0 = arith.constant 0 : i32
    %c0_i32_1 = arith.constant 0 : i32
    return %2, %c0_i32_0 : i32, i32
  }
  func.func @transform_2(%arg0: i32, %arg1: i32) -> (i32, i32, i32, i32) {
    %c0_i32 = arith.constant 0 : i32
    %c0_i32_0 = arith.constant 0 : i32
    %c0_i32_1 = arith.constant 0 : i32
    %c0_i32_2 = arith.constant 0 : i32
    return %arg0, %c0_i32, %c0_i32_0, %c0_i32_1 : i32, i32, i32, i32
  }
}

</mosaic_0001>

<bundles_post_ra>
// kernel: tpu_custom_call.1
= control target key start
LH: loop header
LB: loop body
LE: loop exit
PB: predicated region body
PF: predicated region fallthrough
CT: control target
= control target key end

     0   :  { %7 = vsyncpa [#allocation3], 0  ;;  %s182_s0 = inlined_call_operand.hbm [shape: f32[8,128], index: 0, kind: input, shape index: {}]   ;;  %s183_s1 = inlined_call_operand.hbm [shape: f32[8,128], index: 1, kind: input, shape index: {}]   ;;  %s184_s2 = inlined_call_operand.hbm [shape: f32[1,1,8,128], index: 2, kind: output, shape index: {}]  }
   0x1   :  { %8 = vsyncpa [#allocation6], 0 }
   0x2   :  { %9 = vsyncpa [#allocation4], 0  ;;  %s155_s9 = smov [#allocation2]   ;;  %s156_s11 = smov [#allocation5]  }
   0x3   :  { %s21_s10 = sshll.u32 %s155_s9, 4  ;;  %s36_s12 = sshll.u32 %s156_s11, 4  ;;  %s22_s10 = int_to_ptr.vmem [resolvable:$true] %s21_s10  ;;  %s37_s12 = int_to_ptr.vmem [resolvable:$true] %s36_s12 }
   0x4   :  { %s97_s13 = scalar_lea.vmem %s22_s10, 128  ;;  %p102_p1 = scmp.lt.s32.totalorder %s22_s10, %s22_s10 }
   0x5   :  { %p98_p0 = scmp.ne.s32.totalorder %s22_s10, %s97_s13  ;;  %p103_p2 = scmp.lt.s32.totalorder %s97_s13, %s97_s13 }
   0x7   :  { %p104_p3 = por %p103_p2, %p102_p1 }
   0x9   :  { %p105_p4 = pnand %p104_p3, %p98_p0 }
   0xb   :  { %108 = shalt.err (!%p105_p4)
}
   0xc   :  { %24 = dma.hbm_to_vmem [thread:$0]  %s182_s0, 128, %s22_s10, [#allocation3]  }
   0xd   :  { %s117_s16 = scalar_lea.vmem %s37_s12, 128  ;;  %p122_p6 = scmp.lt.s32.totalorder %s37_s12, %s37_s12 }
   0xe   :  { %p118_p5 = scmp.ne.s32.totalorder %s37_s12, %s117_s16  ;;  %p123_p7 = scmp.lt.s32.totalorder %s117_s16, %s117_s16 }
  0x10   :  { %p124_p8 = por %p123_p7, %p122_p6 }
  0x12   :  { %p125_p9 = pnand %p124_p8, %p118_p5 }
  0x14   :  { %128 = shalt.err (!%p125_p9)
}
  0x15   :  { %39 = dma.hbm_to_vmem [thread:$0]  %s183_s1, 128, %s37_s12, [#allocation6]  }
  0x16   :  { %149 = dma.done.wait [#allocation3], 128  }
  0x17   :  { %150 = vsyncadd [#allocation3], 4294967168 }
  0x18   :  { %151 = dma.done.wait [#allocation6], 128  }
  0x19   :  { %152 = vsyncadd [#allocation6], 4294967168  ;;  %v57_v0 = vld [vmem:[#allocation2] sm:$0xff]  ;;  %v58_v1 = vld [vmem:[#allocation5] sm:$0xff]  ;;  %s157_s19 = smov [#allocation7]  }
  0x1a   :  { %v59_v2 = vsub.f32 %v57_v0, %v58_v1  ;;  %s71_s0 = sshll.u32 %s157_s19, 4  ;;  %s72_s0 = int_to_ptr.vmem [resolvable:$true] %s71_s0 }
  0x1b   :  { %s129_s20 = scalar_lea.vmem %s72_s0, 128  ;;  %p134_p11 = scmp.lt.s32.totalorder %s72_s0, %s72_s0 }
  0x1c   :  { %v60_v3 = vmul.f32 %v59_v2, %v59_v2  ;;  %p130_p10 = scmp.ne.s32.totalorder %s72_s0, %s129_s20  ;;  %p135_p12 = scmp.lt.s32.totalorder %s129_s20, %s129_s20 }
  0x1e   :  { %64 = vst [vmem:[#allocation7] sm:$0xff] %v60_v3  ;;  %p136_p13 = por %p135_p12, %p134_p11 }
  0x20   :  { %p137_p0 = pnand %p136_p13, %p130_p10 }
  0x22   :  { %140 = shalt.err (!%p137_p0)
}
  0x23   :  { %74 = dma.vmem_to_hbm [thread:$0]  %s72_s0, 128, %s184_s2, [#allocation4]  }
  0x24   :  { %153 = dma.done.wait [#allocation4], 128  }
  0x25   :  { %154 = vsyncadd [#allocation4], 4294967168 }
  0x26   :  { %78 = vsyncpa [#allocation3], 1 }
  0x27   :  { %79 = vsyncpa [#allocation6], 1 }
  0x28   :  { %80 = vsyncpa [#allocation4], 1 }

</bundles_post_ra>
